<compile_context>
chip_gen: v5e
topology: v5e:2x2
jax: 0.10.0
libtpu: 0.0.40
codegen_flags: <defaults>
</compile_context>

<pallas_src>
import jax
import jax.numpy as jnp
from jax.experimental import pallas as pl
from jax.experimental.pallas import tpu as pltpu


def _round_up(x, m):
    return ((x + m - 1) // m) * m


def _linear_kernel(x_ref, w_ref, b_ref, o_ref):
    # x_ref: (tm, K) tile, w_ref: (K, tn) tile, b_ref: (1, tn) tile,
    # o_ref: (tm, tn) tile.  Single MXU matmul + fused bias add (VPU).
    acc = jnp.dot(x_ref[...], w_ref[...], preferred_element_type=jnp.float32)
    o_ref[...] = (acc + b_ref[...]).astype(o_ref.dtype)


def _pick_tiles(M, K, N, itemsize, tm_target, vmem_budget_bytes):
    """Pick (tm, tn) so double-buffered tiles fit the VMEM budget, preferring
    the largest lane-dense output tile (ideally the full N, so W is loaded
    exactly once)."""
    # Output-feature tile candidates: full N first, then big multiples of 128.
    tn_cands = [N] + [t for t in (1024, 512, 256, 128) if t < N and N % t == 0]

    # Token tile candidates: multiples of 8, capped by padded M.
    m_cap = _round_up(M, 8)
    tm_cands = [t for t in (tm_target, 256, 128, 64, 32, 16, 8) if t <= m_cap]
    tm_cands = sorted(set(tm_cands), reverse=True)
    if not tm_cands:
        tm_cands = [m_cap]

    def fits(tm, tn):
        # double-buffered x / W / b input tiles + output tile
        return 2 * (tm * K + K * tn + tn + tm * tn) * itemsize <= vmem_budget_bytes

    for tm in tm_cands:
        for tn in tn_cands:
            if fits(tm, tn):
                return tm, tn
    # Pathological fallback: smallest candidates (still correct).
    return tm_cands[-1], tn_cands[-1]


def linear_proj_pallas(x, w, b, *, tm_target=512,
                       vmem_budget_bytes=24 * 1024 * 1024):
    """x: (M, K) f32, w: (K, N) f32, b: (1, N) f32 -> (M, N) f32."""
    M, K = x.shape
    Kw, N = w.shape
    assert Kw == K and b.shape == (1, N)

    tm, tn = _pick_tiles(M, K, N, x.dtype.itemsize, tm_target, vmem_budget_bytes)

    M_pad = _round_up(M, tm)
    if M_pad != M:
        x = jnp.pad(x, ((0, M_pad - M), (0, 0)))

    grid = (M_pad // tm, N // tn)
    out = pl.pallas_call(
        _linear_kernel,
        out_shape=jax.ShapeDtypeStruct((M_pad, N), x.dtype),
        grid_spec=pltpu.PrefetchScalarGridSpec(
            num_scalar_prefetch=0,
            grid=grid,
            in_specs=[
                pl.BlockSpec((tm, K), lambda i, j: (i, 0)),   # x: M-tile, full K
                pl.BlockSpec((K, tn), lambda i, j: (0, j)),   # W: N-tile, full K
                pl.BlockSpec((1, tn), lambda i, j: (0, j)),   # b: N-tile
            ],
            out_specs=pl.BlockSpec((tm, tn), lambda i, j: (i, j)),
        ),
        compiler_params=pltpu.CompilerParams(
            dimension_semantics=("parallel", "parallel"),
            vmem_limit_bytes=32 * 1024 * 1024,
        ),
    )(x, w, b)
    return out[:M] if M_pad != M else out


class LinearPts3dPallas:
    """JAX/Pallas port of dust3r LinearPts3d."""

    def __init__(self, width=64, height=64, patch_size=16, dec_embed_dim=32,
                 has_conf=True, key=jax.random.PRNGKey(0)):
        self.patch_size = patch_size
        self.has_conf = has_conf
        self.num_h = height // patch_size
        self.num_w = width // patch_size
        out_dim = (3 + int(has_conf)) * patch_size ** 2
        kw, kb = jax.random.split(key)
        # deterministic init (matches nn.Linear shapes: weight (out, in), bias (out,))
        bound = 1.0 / jnp.sqrt(dec_embed_dim)
        w_torch = jax.random.uniform(kw, (out_dim, dec_embed_dim),
                                     minval=-bound, maxval=bound, dtype=jnp.float32)
        self.w = jnp.transpose(w_torch)                       # (D, N) for x @ W
        self.b = jax.random.uniform(kb, (1, out_dim),
                                    minval=-bound, maxval=bound, dtype=jnp.float32)

    def __call__(self, tokens_0, tokens_6, tokens_9, tokens_12):
        B, S, D = tokens_12.shape
        p = self.patch_size
        C = 3 + int(self.has_conf)
        assert S == self.num_h * self.num_w

        # --- Pallas hot path: the linear projection ---
        x = tokens_12.reshape(B * S, D)
        feat = linear_proj_pallas(x, self.w, self.b)          # (B*S, C*p*p)
        feat = feat.reshape(B, S, C * p * p)

        # feat.transpose(-1, -2).view(B, -1, num_h, num_w)   (pure layout, JAX)
        feat = jnp.transpose(feat, (0, 2, 1))                 # (B, C*p*p, S)
        feat = feat.reshape(B, C * p * p, self.num_h, self.num_w)

        # F.pixel_shuffle(feat, p): (B, C*p*p, h, w) -> (B, C, h*p, w*p)
        feat = feat.reshape(B, C, p, p, self.num_h, self.num_w)
        feat = jnp.transpose(feat, (0, 1, 4, 2, 5, 3))        # (B, C, h, p, w, p)
        feat = feat.reshape(B, C, self.num_h * p, self.num_w * p)
        return feat                                           # NCHW


if __name__ == "__main__":
    key = jax.random.PRNGKey(0)
    k0, k6, k9, k12, kparam = jax.random.split(key, 5)

    # Small shapes consistent with the module: height=width=64, patch=16 -> S=16 tokens
    B, S, D = 2, 16, 32
    tokens_0 = jax.random.normal(k0, (B, S, D), dtype=jnp.float32)
    tokens_6 = jax.random.normal(k6, (B, S, D), dtype=jnp.float32)
    tokens_9 = jax.random.normal(k9, (B, S, D), dtype=jnp.float32)
    tokens_12 = jax.random.normal(k12, (B, S, D), dtype=jnp.float32)

    head = LinearPts3dPallas(width=64, height=64, patch_size=16,
                             dec_embed_dim=D, has_conf=True, key=kparam)

    out = head(tokens_0, tokens_6, tokens_9, tokens_12)
    out = jax.block_until_ready(out)
    assert out.shape == (B, 4, 64, 64), out.shape

    # Pure-JAX reference check of the whole forward (matmul + pixel_shuffle)
    ref = tokens_12.reshape(B * S, D) @ head.w + head.b
    ref = ref.reshape(B, S, -1)
    ref = jnp.transpose(ref, (0, 2, 1)).reshape(B, -1, 4, 4)
    ref = ref.reshape(B, 4, 16, 16, 4, 4)
    ref = jnp.transpose(ref, (0, 1, 4, 2, 5, 3)).reshape(B, 4, 64, 64)
    assert jnp.allclose(out, ref, atol=1e-5, rtol=1e-5)

    print("KERNEL_OK")
</pallas_src>

<mosaic_0001>
module attributes {stable_mosaic.version = 11 : i64} {
  func.func @_linear_kernel(%arg0: i32, %arg1: i32, %arg2: memref<32x32xf32, #tpu.memory_space<vmem>>, %arg3: memref<32x1024xf32, #tpu.memory_space<vmem>>, %arg4: memref<1x1024xf32, #tpu.memory_space<vmem>>, %arg5: memref<32x1024xf32, #tpu.memory_space<vmem>>) attributes {dimension_semantics = [#tpu.dimension_semantics<parallel>, #tpu.dimension_semantics<parallel>], iteration_bounds = array<i64: 1, 1>, scalar_prefetch = 0 : i64, scratch_operands = 0 : i64, tpu.core_type = #tpu.core_type<tc>, window_params = [{transform_indices = @transform_0, window_bounds = array<i64: 32, 32>}, {transform_indices = @transform_1, window_bounds = array<i64: 32, 1024>}, {transform_indices = @transform_2, window_bounds = array<i64: 1, 1024>}, {transform_indices = @transform_3, window_bounds = array<i64: 32, 1024>}]} {
    %c0 = arith.constant 0 : index
    %c0_0 = arith.constant 0 : index
    %0 = vector.load %arg2[%c0, %c0_0] : memref<32x32xf32, #tpu.memory_space<vmem>>, vector<32x32xf32>
    %c0_1 = arith.constant 0 : index
    %c0_2 = arith.constant 0 : index
    %1 = vector.load %arg3[%c0_1, %c0_2] : memref<32x1024xf32, #tpu.memory_space<vmem>>, vector<32x1024xf32>
    %cst = arith.constant dense<0.000000e+00> : vector<32x1024xf32>
    %2 = tpu.matmul %0, %1, %cst {dimension_numbers = #tpu.dot_dimension_numbers<[1], [0], [0], [1], [0, 0, 1, 1], [], []>} : vector<32x32xf32>, vector<32x1024xf32>, vector<32x1024xf32> -> vector<32x1024xf32>
    %c0_3 = arith.constant 0 : index
    %c0_4 = arith.constant 0 : index
    %3 = vector.load %arg4[%c0_3, %c0_4] : memref<1x1024xf32, #tpu.memory_space<vmem>>, vector<1x1024xf32>
    %4 = vector.broadcast %3 : vector<1x1024xf32> to vector<32x1024xf32>
    %5 = arith.addf %2, %4 : vector<32x1024xf32>
    %c0_5 = arith.constant 0 : index
    %c0_6 = arith.constant 0 : index
    %6 = vector.load %arg5[%c0_5, %c0_6] : memref<32x1024xf32, #tpu.memory_space<vmem>>, vector<32x1024xf32>
    tpu.vector_store %arg5[%c0_5, %c0_6], %5 {strides = array<i32>} : memref<32x1024xf32, #tpu.memory_space<vmem>>, vector<32x1024xf32>,
    return
  }
  func.func @transform_0(%arg0: i32, %arg1: i32) -> (i32, i32) {
    %c0_i32 = arith.constant 0 : i32
    %c0_i32_0 = arith.constant 0 : i32
    return %arg0, %c0_i32 : i32, i32
  }
  func.func @transform_1(%arg0: i32, %arg1: i32) -> (i32, i32) {
    %c0_i32 = arith.constant 0 : i32
    %c0_i32_0 = arith.constant 0 : i32
    return %c0_i32, %arg1 : i32, i32
  }
  func.func @transform_2(%arg0: i32, %arg1: i32) -> (i32, i32) {
    %c0_i32 = arith.constant 0 : i32
    %c0_i32_0 = arith.constant 0 : i32
    return %c0_i32, %arg1 : i32, i32
  }
  func.func @transform_3(%arg0: i32, %arg1: i32) -> (i32, i32) {
    %c0_i32 = arith.constant 0 : i32
    return %arg0, %arg1 : i32, i32
  }
}

</mosaic_0001>

<bundles_post_ra>
// kernel: tpu_custom_call.1
= control target key start
LH: loop header
LB: loop body
LE: loop exit
PB: predicated region body
PF: predicated region fallthrough
CT: control target
= control target key end

     0   :  { %8 = vsyncpa [#allocation3], 0  ;;  %s641_s0 = inlined_call_operand.hbm [shape: f32[32,32], index: 0, kind: input, shape index: {}]   ;;  %s642_s1 = inlined_call_operand.hbm [shape: f32[32,1024], index: 1, kind: input, shape index: {}]   ;;  %s643_s2 = inlined_call_operand.hbm [shape: f32[1,1024], index: 2, kind: input, shape index: {}]   ;;  %s644_s3 = inlined_call_operand.hbm [shape: f32[32,1024], index: 3, kind: output, shape index: {}]  }
   0x1   :  { %9 = vsyncpa [#allocation6], 0  ;;  %s28_s14 = sshll.u32 %s642_s1, 4  ;;  %s29_s14 = int_to_ptr.hbm [resolvable:$true] %s28_s14 }
   0x2   :  { %10 = vsyncpa [#allocation4], 0  ;;  %s553_s15 = smov [#allocation5]   ;;  %s15_s19 = sshll.u32 %s641_s0, 4  ;;  %s16_s19 = int_to_ptr.hbm [resolvable:$true] %s15_s19 }
   0x3   :  { %s30_s16 = sshll.u32 %s553_s15, 4  ;;  %s554_s20 = smov 1024   ;;  %s31_s16 = int_to_ptr.vmem [resolvable:$true] %s30_s16 }
   0x4   :  { %s555_s21 = smov 64   ;;  %s556_s22 = smov [#allocation2]  }
   0x5   :  { %36 = dma.hbm_to_vmem [thread:$0]  %s29_s14, 4096, %s31_s16, [#allocation6], %s554_s20, %s554_s20, %s555_s21  }
   0x6   :  { %s17_s23 = sshll.u32 %s556_s22, 4  ;;  %s557_s1 = smov 128   ;;  %s18_s23 = int_to_ptr.vmem [resolvable:$true] %s17_s23 }
   0x7   :  { %s558_s24 = smov 8   ;;  %s42_s27 = sshll.u32 %s643_s2, 4  ;;  %s43_s27 = int_to_ptr.hbm [resolvable:$true] %s42_s27 }
   0x8   :  { %23 = dma.hbm_to_vmem [thread:$0]  %s16_s19, 512, %s18_s23, [#allocation3], %s557_s1, %s557_s1, %s558_s24  }
   0x9   :  { %s559_s28 = smov [#allocation7]  }
   0xa   :  { %s44_s0 = sshll.u32 %s559_s28, 4  ;;  %s45_s0 = int_to_ptr.vmem [resolvable:$true] %s44_s0 }
   0xb   :  { %47 = dma.hbm_to_vmem [thread:$0]  %s43_s27, 128, %s45_s0, [#allocation6]  }
   0xc   :  { %547 = dma.done.wait [#allocation3], 512  }
   0xd   :  { %548 = vsyncadd [#allocation3], 4294966784 }
   0xe   :  { %549 = dma.done.wait [#allocation6], 4224  }
   0xf   :  { %550 = vsyncadd [#allocation6], 4294963072  ;;  %v90_v0 = vld [vmem:[#allocation5 + $0xd0] sm:$0xff]  ;;  %v91_v1 = vld [vmem:[#allocation5 + $0xd8] sm:$0xff]  ;;  %vm114_vm0 = vcmask 261120   ;;  %s560_s2 = smov [#allocation8]  }
  0x10   :  { %v82_v2 = vld [vmem:[#allocation5 + $0x90] sm:$0xff]  ;;  %197 = vmatpush.msra.mxu2 %v90_v0  ;;  %226 = vmatpush.msra.mxu3 %v91_v1  ;;  %v83_v3 = vld [vmem:[#allocation5 + $0x98] sm:$0xff]  ;;  %v88_v6 = vld [vmem:[#allocation5 + $0xc0] sm:$0xff]  ;;  %s395_s29 = sshll.u32 %s560_s2, 4  ;;  %s397_s5 = sshll.u32 %s644_s3, 4  ;;  %s396_s29 = int_to_ptr.vmem [resolvable:$true] %s395_s29  ;;  %s398_s5 = int_to_ptr.hbm [resolvable:$true] %s397_s5 }
  0x11   :  { %v74_v4 = vld [vmem:[#allocation5 + $0x50] sm:$0xff]  ;;  %v75_v5 = vld [vmem:[#allocation5 + $0x58] sm:$0xff]  ;;  %v89_v7 = vld [vmem:[#allocation5 + $0xc8] sm:$0xff]  ;;  %139 = vmatpush.msra.mxu0 %v88_v6 }
  0x12   :  { %198 = vmatpush.msra.mxu2 %v82_v2  ;;  %227 = vmatpush.msra.mxu3 %v83_v3  ;;  %v66_v8 = vld [vmem:[#allocation5 + $0x10] sm:$0xff]  ;;  %v67_v9 = vld [vmem:[#allocation5 + $0x18] sm:$0xff]  ;;  %v80_v10 = vld [vmem:[#allocation5 + $0x80] sm:$0xff] }
  0x13   :  { %168 = vmatpush.msra.mxu1 %v89_v7  ;;  %v81_v11 = vld [vmem:[#allocation5 + $0x88] sm:$0xff]  ;;  %v593_v12 = vld [vmem:[#allocation2] sm:$0xff]  ;;  %v94_v13 = vld [vmem:[#allocation5 + $0xf0] sm:$0xff]  ;;  %140 = vmatpush.msra.mxu0 %v80_v10 }
  0x14   :  { %199 = vmatpush.msra.mxu2 %v74_v4  ;;  %228 = vmatpush.msra.mxu3 %v75_v5  ;;  %v95_v14 = vld [vmem:[#allocation5 + $0xf8] sm:$0xff]  ;;  %v72_v15 = vld [vmem:[#allocation5 + $0x40] sm:$0xff]  ;;  %v73_v16 = vld [vmem:[#allocation5 + $0x48] sm:$0xff] }
  0x15   :  { %169 = vmatpush.msra.mxu1 %v81_v11  ;;  %v86_v17 = vld [vmem:[#allocation5 + $0xb0] sm:$0xff]  ;;  %v87_v18 = vld [vmem:[#allocation5 + $0xb8] sm:$0xff]  ;;  %v64_v19 = vld [vmem:[#allocation5] sm:$0xff]  ;;  %141 = vmatpush.msra.mxu0 %v72_v15 }
  0x16   :  { %200 = vmatpush.msra.mxu2 %v66_v8  ;;  %229 = vmatpush.msra.mxu3 %v67_v9  ;;  %v65_v20 = vld [vmem:[#allocation5 + $0x8] sm:$0xff]  ;;  %v92_v21 = vld [vmem:[#allocation5 + $0xe0] sm:$0xff]  ;;  %v78_v23 = vld [vmem:[#allocation5 + $0x70] sm:$0xff] }
  0x17   :  { %419 = vmatmul.msk.f32.vlgmr.msra.gmra.mxu2 %vm114_vm0, %v593_v12  ;;  %423 = vmatmul.msk.f32.vlgmr.msra.gmra.mxu3 %vm114_vm0, %v593_v12  ;;  %v93_v22 = vld [vmem:[#allocation5 + $0xe8] sm:$0xff]  ;;  %v79_v24 = vld [vmem:[#allocation5 + $0x78] sm:$0xff]  ;;  %v84_v26 = vld [vmem:[#allocation5 + $0xa0] sm:$0xff] }
  0x18   :  { %313 = vmatpush.msrb.mxu2 %v94_v13  ;;  %342 = vmatpush.msrb.mxu3 %v95_v14  ;;  %v61_v25 = vld [vmem:[#allocation2 + $0x8] sm:$0xff]  ;;  %v70_v28 = vld [vmem:[#allocation5 + $0x30] sm:$0xff]  ;;  %v71_v29 = vld [vmem:[#allocation5 + $0x38] sm:$0xff] }
  0x19   :  { %170 = vmatpush.msra.mxu1 %v73_v16  ;;  %142 = vmatpush.msra.mxu0 %v64_v19  ;;  %v85_v27 = vld [vmem:[#allocation5 + $0xa8] sm:$0xff]  ;;  %v76_v30 = vld [vmem:[#allocation5 + $0x60] sm:$0xff]  ;;  %v62_v34 = vld [vmem:[#allocation2 + $0x10] sm:$0xff] }
  0x1a   :  { %314 = vmatpush.msrb.mxu2 %v86_v17  ;;  %343 = vmatpush.msrb.mxu3 %v87_v18  ;;  %v77_v31 = vld [vmem:[#allocation5 + $0x68] sm:$0xff]  ;;  %v68_v32 = vld [vmem:[#allocation5 + $0x20] sm:$0xff]  ;;  %v63_v35 = vld [vmem:[#allocation2 + $0x18] sm:$0xff] }
  0x1b   :  { %171 = vmatpush.msra.mxu1 %v65_v20  ;;  %411 = vmatmul.msk.f32.vlgmr.msra.gmra.mxu0 %vm114_vm0, %v593_v12  ;;  %v69_v33 = vld [vmem:[#allocation5 + $0x28] sm:$0xff]  ;;  %v96_v36 = vld [vmem:[#allocation7] sm:$0xff] }
  0x1c   :  { %415 = vmatmul.msk.f32.vlgmr.msra.gmra.mxu1 %vm114_vm0, %v593_v12  ;;  %255 = vmatpush.msrb.mxu0 %v92_v21  ;;  %v98_v37 = vperm.slane %v96_v36, 0  ;;  %v99_v38 = vperm.slane %v96_v36, 1  ;;  %v100_v39 = vperm.slane %v96_v36, 2  ;;  %v101_v40 = vperm.slane %v96_v36, 3 }
  0x1d   :  { %284 = vmatpush.msrb.mxu1 %v93_v22  ;;  %315 = vmatpush.msrb.mxu2 %v78_v23  ;;  %v102_v9 = vperm.slane %v96_v36, 4  ;;  %v103_v10 = vperm.slane %v96_v36, 5  ;;  %v104_v11 = vperm.slane %v96_v36, 6 }
  0x1e   :  { %344 = vmatpush.msrb.mxu3 %v79_v24  ;;  %256 = vmatpush.msrb.mxu0 %v84_v26 }
  0x1f   :  { %420 = vmatmul.msk.f32.gmra.mxu2 %vm114_vm0, %v61_v25  ;;  %424 = vmatmul.msk.f32.gmra.mxu3 %vm114_vm0, %v61_v25 }
  0x20   :  { %285 = vmatpush.msrb.mxu1 %v85_v27  ;;  %316 = vmatpush.msrb.mxu2 %v70_v28 }
  0x21   :  { %345 = vmatpush.msrb.mxu3 %v71_v29  ;;  %257 = vmatpush.msrb.mxu0 %v76_v30 }
  0x22   :  { %286 = vmatpush.msrb.mxu1 %v77_v31 }
  0x23   :  { %412 = vmatmul.msk.f32.gmra.mxu0 %vm114_vm0, %v61_v25 }
  0x24   :  { %416 = vmatmul.msk.f32.gmra.mxu1 %vm114_vm0, %v61_v25  ;;  %258 = vmatpush.msrb.mxu0 %v68_v32 }
  0x25   :  { %287 = vmatpush.msrb.mxu1 %v69_v33 }
  0x27   :  { %421 = vmatmul.msk.f32.gmra.mxu2 %vm114_vm0, %v62_v34  ;;  %425 = vmatmul.msk.f32.gmra.mxu3 %vm114_vm0, %v62_v34 }
  0x2b   :  { %413 = vmatmul.msk.f32.gmra.mxu0 %vm114_vm0, %v62_v34 }
  0x2c   :  { %417 = vmatmul.msk.f32.gmra.mxu1 %vm114_vm0, %v62_v34 }
  0x2f   :  { %422 = vmatmul.msk.f32.gmra.mxu2 %vm114_vm0, %v63_v35  ;;  %426 = vmatmul.msk.f32.gmra.mxu3 %vm114_vm0, %v63_v35 }
  0x33   :  { %414 = vmatmul.msk.f32.gmra.mxu0 %vm114_vm0, %v63_v35 }
  0x34   :  { %418 = vmatmul.msk.f32.gmra.mxu1 %vm114_vm0, %v63_v35 }
  0x37   :  { %435 = vmatmul.msk.f32.vlgmr.msrb.gmra.mxu2 %vm114_vm0, %v593_v12  ;;  %439 = vmatmul.msk.f32.vlgmr.msrb.gmra.mxu3 %vm114_vm0, %v593_v12 }
  0x3b   :  { %427 = vmatmul.msk.f32.vlgmr.msrb.gmra.mxu0 %vm114_vm0, %v593_v12 }
  0x3c   :  { %431 = vmatmul.msk.f32.vlgmr.msrb.gmra.mxu1 %vm114_vm0, %v593_v12  ;;  %v105_v12 = vperm.slane %v96_v36, 7 }
  0x3f   :  { %436 = vmatmul.msk.f32.gmra.mxu2 %vm114_vm0, %v61_v25  ;;  %440 = vmatmul.msk.f32.gmra.mxu3 %vm114_vm0, %v61_v25 }
  0x43   :  { %428 = vmatmul.msk.f32.gmra.mxu0 %vm114_vm0, %v61_v25 }
  0x44   :  { %432 = vmatmul.msk.f32.gmra.mxu1 %vm114_vm0, %v61_v25 }
  0x47   :  { %437 = vmatmul.msk.f32.gmra.mxu2 %vm114_vm0, %v62_v34  ;;  %441 = vmatmul.msk.f32.gmra.mxu3 %vm114_vm0, %v62_v34 }
  0x4b   :  { %429 = vmatmul.msk.f32.gmra.mxu0 %vm114_vm0, %v62_v34 }
  0x4c   :  { %433 = vmatmul.msk.f32.gmra.mxu1 %vm114_vm0, %v62_v34 }
  0x4f   :  { %438 = vmatmul.msk.f32.gmra.mxu2 %vm114_vm0, %v63_v35  ;;  %442 = vmatmul.msk.f32.gmra.mxu3 %vm114_vm0, %v63_v35 }
  0x53   :  { %430 = vmatmul.msk.f32.gmra.mxu0 %vm114_vm0, %v63_v35 }
  0x54   :  { %434 = vmatmul.msk.f32.gmra.mxu1 %vm114_vm0, %v63_v35 }
  0x98   :  { %v144_v41 = vpop.f32.mrf.mxu0 }
  0x99   :  { %v173_v42 = vpop.f32.mrf.mxu1  ;;  %v145_v43 = vadd.f32 %v144_v41, %v98_v37 }
  0x9a   :  { %v174_v44 = vadd.f32 %v173_v42, %v99_v38  ;;  %v202_v45 = vpop.f32.mrf.mxu2  ;;  %v231_v46 = vpop.f32.mrf.mxu3 }
  0x9b   :  { %v203_v47 = vadd.f32 %v202_v45, %v100_v39  ;;  %v232_v48 = vadd.f32 %v231_v46, %v101_v40  ;;  %359 = vst [vmem:[#allocation8] sm:$0xff] %v145_v43 }
  0x9c   :  { %360 = vst [vmem:[#allocation8 + $0x8] sm:$0xff] %v174_v44 }
  0x9d   :  { %361 = vst [vmem:[#allocation8 + $0x10] sm:$0xff] %v203_v47 }
  0x9e   :  { %362 = vst [vmem:[#allocation8 + $0x18] sm:$0xff] %v232_v48 }
  0xa0   :  { %v147_v49 = vpop.f32.mrf.mxu0 }
  0xa1   :  { %v176_v50 = vpop.f32.mrf.mxu1  ;;  %v148_v51 = vadd.f32 %v147_v49, %v98_v37 }
  0xa2   :  { %v177_v52 = vadd.f32 %v176_v50, %v99_v38  ;;  %v205_v53 = vpop.f32.mrf.mxu2  ;;  %v234_v54 = vpop.f32.mrf.mxu3 }
  0xa3   :  { %v206_v55 = vadd.f32 %v205_v53, %v100_v39  ;;  %v235_v56 = vadd.f32 %v234_v54, %v101_v40  ;;  %367 = vst [vmem:[#allocation8 + $0x40] sm:$0xff] %v148_v51 }
  0xa4   :  { %368 = vst [vmem:[#allocation8 + $0x48] sm:$0xff] %v177_v52 }
  0xa5   :  { %369 = vst [vmem:[#allocation8 + $0x50] sm:$0xff] %v206_v55 }
  0xa6   :  { %370 = vst [vmem:[#allocation8 + $0x58] sm:$0xff] %v235_v56 }
  0xa8   :  { %v150_v57 = vpop.f32.mrf.mxu0 }
  0xa9   :  { %v179_v58 = vpop.f32.mrf.mxu1  ;;  %v151_v59 = vadd.f32 %v150_v57, %v98_v37 }
  0xaa   :  { %v180_v60 = vadd.f32 %v179_v58, %v99_v38  ;;  %v208_v61 = vpop.f32.mrf.mxu2  ;;  %v237_v62 = vpop.f32.mrf.mxu3 }
  0xab   :  { %v209_v63 = vadd.f32 %v208_v61, %v100_v39  ;;  %v238_v0 = vadd.f32 %v237_v62, %v101_v40  ;;  %375 = vst [vmem:[#allocation8 + $0x80] sm:$0xff] %v151_v59 }
  0xac   :  { %376 = vst [vmem:[#allocation8 + $0x88] sm:$0xff] %v180_v60 }
  0xad   :  { %377 = vst [vmem:[#allocation8 + $0x90] sm:$0xff] %v209_v63 }
  0xae   :  { %378 = vst [vmem:[#allocation8 + $0x98] sm:$0xff] %v238_v0 }
  0xb0   :  { %v153_v1 = vpop.f32.mrf.mxu0 }
  0xb1   :  { %v182_v2 = vpop.f32.mrf.mxu1  ;;  %v154_v3 = vadd.f32 %v153_v1, %v98_v37 }
  0xb2   :  { %v183_v4 = vadd.f32 %v182_v2, %v99_v38  ;;  %v211_v5 = vpop.f32.mrf.mxu2  ;;  %v240_v6 = vpop.f32.mrf.mxu3 }
  0xb3   :  { %v212_v7 = vadd.f32 %v211_v5, %v100_v39  ;;  %v241_v8 = vadd.f32 %v240_v6, %v101_v40  ;;  %383 = vst [vmem:[#allocation8 + $0xc0] sm:$0xff] %v154_v3 }
  0xb4   :  { %384 = vst [vmem:[#allocation8 + $0xc8] sm:$0xff] %v183_v4 }
  0xb5   :  { %385 = vst [vmem:[#allocation8 + $0xd0] sm:$0xff] %v212_v7 }
  0xb6   :  { %386 = vst [vmem:[#allocation8 + $0xd8] sm:$0xff] %v241_v8 }
  0xb8   :  { %v260_v13 = vpop.f32.mrf.mxu0 }
  0xb9   :  { %v289_v14 = vpop.f32.mrf.mxu1  ;;  %v261_v15 = vadd.f32 %v260_v13, %v102_v9 }
  0xba   :  { %v290_v16 = vadd.f32 %v289_v14, %v103_v10  ;;  %v318_v17 = vpop.f32.mrf.mxu2  ;;  %v347_v18 = vpop.f32.mrf.mxu3 }
  0xbb   :  { %v319_v19 = vadd.f32 %v318_v17, %v104_v11  ;;  %v348_v20 = vadd.f32 %v347_v18, %v105_v12  ;;  %363 = vst [vmem:[#allocation8 + $0x20] sm:$0xff] %v261_v15 }
  0xbc   :  { %364 = vst [vmem:[#allocation8 + $0x28] sm:$0xff] %v290_v16 }
  0xbd   :  { %365 = vst [vmem:[#allocation8 + $0x30] sm:$0xff] %v319_v19 }
  0xbe   :  { %366 = vst [vmem:[#allocation8 + $0x38] sm:$0xff] %v348_v20 }
  0xc0   :  { %v263_v21 = vpop.f32.mrf.mxu0 }
  0xc1   :  { %v292_v22 = vpop.f32.mrf.mxu1  ;;  %v264_v23 = vadd.f32 %v263_v21, %v102_v9 }
  0xc2   :  { %v293_v24 = vadd.f32 %v292_v22, %v103_v10  ;;  %v321_v25 = vpop.f32.mrf.mxu2  ;;  %v350_v26 = vpop.f32.mrf.mxu3 }
  0xc3   :  { %v322_v27 = vadd.f32 %v321_v25, %v104_v11  ;;  %v351_v28 = vadd.f32 %v350_v26, %v105_v12  ;;  %371 = vst [vmem:[#allocation8 + $0x60] sm:$0xff] %v264_v23 }
  0xc4   :  { %372 = vst [vmem:[#allocation8 + $0x68] sm:$0xff] %v293_v24 }
  0xc5   :  { %373 = vst [vmem:[#allocation8 + $0x70] sm:$0xff] %v322_v27 }
  0xc6   :  { %374 = vst [vmem:[#allocation8 + $0x78] sm:$0xff] %v351_v28 }
  0xc8   :  { %v266_v29 = vpop.f32.mrf.mxu0 }
  0xc9   :  { %v295_v30 = vpop.f32.mrf.mxu1  ;;  %v267_v31 = vadd.f32 %v266_v29, %v102_v9 }
  0xca   :  { %v296_v32 = vadd.f32 %v295_v30, %v103_v10  ;;  %v324_v33 = vpop.f32.mrf.mxu2  ;;  %v353_v34 = vpop.f32.mrf.mxu3 }
  0xcb   :  { %v325_v35 = vadd.f32 %v324_v33, %v104_v11  ;;  %v354_v36 = vadd.f32 %v353_v34, %v105_v12  ;;  %379 = vst [vmem:[#allocation8 + $0xa0] sm:$0xff] %v267_v31 }
  0xcc   :  { %380 = vst [vmem:[#allocation8 + $0xa8] sm:$0xff] %v296_v32 }
  0xcd   :  { %381 = vst [vmem:[#allocation8 + $0xb0] sm:$0xff] %v325_v35 }
  0xce   :  { %382 = vst [vmem:[#allocation8 + $0xb8] sm:$0xff] %v354_v36 }
  0xd0   :  { %v269_v37 = vpop.f32.mrf.mxu0 }
  0xd1   :  { %v298_v38 = vpop.f32.mrf.mxu1  ;;  %v270_v39 = vadd.f32 %v269_v37, %v102_v9 }
  0xd2   :  { %v299_v40 = vadd.f32 %v298_v38, %v103_v10  ;;  %v327_v41 = vpop.f32.mrf.mxu2  ;;  %v356_v42 = vpop.f32.mrf.mxu3 }
  0xd3   :  { %v328_v43 = vadd.f32 %v327_v41, %v104_v11  ;;  %v357_v44 = vadd.f32 %v356_v42, %v105_v12  ;;  %387 = vst [vmem:[#allocation8 + $0xe0] sm:$0xff] %v270_v39 }
  0xd4   :  { %388 = vst [vmem:[#allocation8 + $0xe8] sm:$0xff] %v299_v40 }
  0xd5   :  { %389 = vst [vmem:[#allocation8 + $0xf0] sm:$0xff] %v328_v43 }
  0xd6   :  { %390 = vst [vmem:[#allocation8 + $0xf8] sm:$0xff] %v357_v44 }
  0xd7   :  { %403 = dma.vmem_to_hbm [thread:$0]  %s396_s29, 4096, %s398_s5, [#allocation4], %s554_s20, %s554_s20, %s555_s21  }
  0xd8   :  { %551 = dma.done.wait [#allocation4], 4096  }
  0xd9   :  { %552 = vsyncadd [#allocation4], 4294963200 }
  0xda   :  { %408 = vsyncpa [#allocation3], 1 }
  0xdb   :  { %409 = vsyncpa [#allocation6], 1 }
  0xdc   :  { %410 = vsyncpa [#allocation4], 1 }

</bundles_post_ra>
